<compile_context>
chip_gen: v7x
topology: tpu7x:2x2x1
jax: 0.10.0
libtpu: 0.0.40
codegen_flags: <defaults>
</compile_context>

<pallas_src>
import jax
import jax.numpy as jnp
from jax.experimental import pallas as pl
from jax.experimental.pallas import tpu as pltpu

LANE = 128

# Flipped to False at runtime if this jax/TPU combo rejects pl.Buffered(1).
_BUFFERED1_OK = [True]


def _round_up(x, m):
    return ((x + m - 1) // m) * m


def _vmem_caps():
    """(alloc_budget_bytes, vmem_limit_bytes) adapted to the TPU generation."""
    try:
        cap = int(pltpu.get_tpu_info().vmem_capacity_bytes)
    except Exception:
        cap = 64 * 1024 * 1024          # assume the smallest (v7x-safe)
    alloc_budget = min(80 * 1024 * 1024, cap // 2)        # what we account for
    vmem_limit = min(112 * 1024 * 1024, (cap * 3) // 4)   # scoped limit + headroom
    return alloc_budget, vmem_limit


def _choose_tiles(B, K_p, H_p, x_elt_bytes, budget):
    """Pick (TB, TK, n_k) under a VMEM byte budget."""
    # --- K tile: keep the whole bf16 w1 resident when it fits half the budget,
    # otherwise stream double-buffered (TK, H_p) tiles along a K grid axis.
    w1_budget = budget // 2
    if K_p * H_p * 2 <= w1_budget:
        tk = K_p
    else:
        d = K_p // LANE
        while d > 1 and 2 * (d * LANE) * H_p * 2 > w1_budget:
            d -= 1
            while d > 1 and (K_p // LANE) % d != 0:
                d -= 1
        tk = d * LANE
        # TODO(synk): also tile H_p (second accumulator pass) if even one
        # (128, H_p) w1 tile cannot fit the budget.
    n_k = K_p // tk

    w1_bufs = 1 if n_k == 1 else 2
    fixed = w1_bufs * tk * H_p * 2                 # w1 tile(s), bf16
    fixed += 2 * (2 * H_p * 4 + LANE * 4)          # b1 / w2 rows / b2 (worst case)

    per_row = (2 * tk * x_elt_bytes                # x tile, double-buffered
               + 2 * H_p * 4                       # f32 h accumulator + temps
               + 2 * LANE * 4)                     # (TB,1) out tile (lane-padded VMEM), 2 bufs
    tb_max = (budget - fixed) // per_row
    tb_max = max(16, min(2048, (tb_max // 16) * 16))

    b_al = _round_up(B, 16)
    if b_al <= tb_max:
        # One tile covers the batch; once it's >=512 rows, split in two so
        # v7x's 2 TensorCores both get a (>=256-row, MXU-filling) tile.
        tb = _round_up(-(-b_al // 2), 16) if b_al >= 512 else b_al
    else:
        n_b = -(-b_al // tb_max)
        tb = min(tb_max, _round_up(-(-B // n_b), 16))
    return max(16, tb), tk, n_k


def _discriminator_kernel(x_ref, w1_ref, b1_ref, w2_ref, b2_ref, o_ref, h_acc):
    # x_ref:  (TB, TK)   f32 or bf16 (cast below)
    # w1_ref: (TK, H_p)  bf16        b1_ref: (1, H_p) f32
    # w2_ref: (1, H_p)   f32         b2_ref: (1, 1)   f32
    # o_ref:  (TB, 1)    f32         h_acc:  (TB, H_p) f32 scratch
    k = pl.program_id(1)

    @pl.when(k == 0)
    def _init():
        h_acc[...] = jnp.zeros_like(h_acc)

    # fc1 partial product: bf16 MXU matmul, f32 accumulation in VMEM scratch.
    h_acc[...] += jnp.dot(x_ref[...].astype(jnp.bfloat16), w1_ref[...],
                          preferred_element_type=jnp.float32)

    @pl.when(k == pl.num_programs(1) - 1)
    def _finish():
        h = jnp.maximum(h_acc[...] + b1_ref[...], 0.0)           # bias + ReLU (VPU, f32)
        # fc2 (out_features == 1): VPU multiply + XLU lane reduction in f32 —
        # no 128x-padded MXU matmul.
        logits = jnp.sum(h * w2_ref[...], axis=-1, keepdims=True) + b2_ref[...]
        # TODO(synk): pack logits lane-dense ((TB//128, 128)) before the sigmoid
        # to cut EUP vreg count ~128x if the epilogue ever becomes EUP-bound.
        o_ref[...] = jax.nn.sigmoid(logits)


def _pallas_forward(x_in, w1_p, b1_p, w2_row, b2_p, *, tb, tk, single_buffer,
                    vmem_limit):
    B, K_p = x_in.shape
    H_p = w1_p.shape[1]
    n_b = pl.cdiv(B, tb)
    n_k = K_p // tk

    def const_spec(shape):
        if single_buffer:
            return pl.BlockSpec(shape, lambda i, k: (0, 0),
                                pipeline_mode=pl.Buffered(buffer_count=1))
        return pl.BlockSpec(shape, lambda i, k: (0, 0))

    if n_k == 1:
        w1_spec = const_spec((tk, H_p))                   # VMEM-resident
    else:
        w1_spec = pl.BlockSpec((tk, H_p), lambda i, k: (k, 0))  # streamed K tiles

    cost = pl.CostEstimate(
        flops=2 * B * K_p * H_p + 2 * B * H_p,
        transcendentals=B,
        bytes_accessed=(x_in.size * x_in.dtype.itemsize
                        + (n_b if n_k > 1 else 1) * w1_p.size * 2
                        + b1_p.size * 4 + w2_row.size * 4 + 4
                        + B * 4),
    )

    return pl.pallas_call(
        _discriminator_kernel,
        out_shape=jax.ShapeDtypeStruct((B, 1), jnp.float32),
        grid_spec=pltpu.PrefetchScalarGridSpec(
            num_scalar_prefetch=0,
            grid=(n_b, n_k),
            in_specs=[
                pl.BlockSpec((tb, tk), lambda i, k: (i, k)),   # x: batch x K tiles
                w1_spec,
                const_spec((1, H_p)),                          # b1
                const_spec((1, H_p)),                          # w2 row
                const_spec((1, 1)),                            # b2
            ],
            out_specs=pl.BlockSpec((tb, 1), lambda i, k: (i, 0)),
            scratch_shapes=[pltpu.VMEM((tb, H_p), jnp.float32)],
        ),
        compiler_params=pltpu.CompilerParams(
            dimension_semantics=("parallel", "arbitrary"),
            vmem_limit_bytes=int(vmem_limit),
        ),
        cost_estimate=cost,
    )(x_in, w1_p, b1_p, w2_row, b2_p)


def prepare_discriminator_params(w1, b1, w2, b2):
    """Pad + cast the weights ONCE (hoisted out of the forward pass).

    w1: (input_size, hidden)  b1: (hidden,)  w2: (hidden, 1)  b2: (1,)
    """
    input_size, hidden = w1.shape
    assert w2.shape == (hidden, 1)
    K_p = _round_up(input_size, LANE)
    H_p = _round_up(hidden, LANE)
    w1_p = jnp.zeros((K_p, H_p), jnp.bfloat16).at[:input_size, :hidden].set(
        w1.astype(jnp.bfloat16))
    b1_p = jnp.zeros((1, H_p), jnp.float32).at[0, :hidden].set(
        b1.astype(jnp.float32))
    w2_row = jnp.zeros((1, H_p), jnp.float32).at[0, :hidden].set(
        w2.reshape(-1).astype(jnp.float32))
    b2_p = jnp.asarray(b2, jnp.float32).reshape(1, 1)
    return {"w1": w1_p, "b1": b1_p, "w2": w2_row, "b2": b2_p,
            "input_size": input_size, "hidden": hidden}


def discriminator_forward(x, params, *, force_tk=None):
    """x: (B, ...) -> (B, 1) f32 probabilities (matches the PyTorch module)."""
    w1_p, b1_p = params["w1"], params["b1"]
    w2_row, b2_p = params["w2"], params["b2"]
    input_size = params["input_size"]
    K_p, H_p = w1_p.shape

    B = x.shape[0]
    x2d = x.reshape(B, -1)
    assert x2d.shape[1] == input_size

    budget, vmem_limit = _vmem_caps()

    # Zero-copy fast path when no K padding is needed: pass x as-is and cast to
    # bf16 inside the kernel.  Otherwise pad K once (to bf16, the cheap copy).
    if K_p == input_size:
        x_in = x2d
    else:
        x_in = jnp.zeros((B, K_p), jnp.bfloat16).at[:, :input_size].set(
            x2d.astype(jnp.bfloat16))
    x_elt = x_in.dtype.itemsize

    tb, tk, n_k = _choose_tiles(B, K_p, H_p, x_elt, budget)
    if force_tk is not None:
        assert force_tk % LANE == 0 and K_p % force_tk == 0
        tk, n_k = force_tk, K_p // force_tk

    single = _BUFFERED1_OK[0]
    try:
        out = _pallas_forward(x_in, w1_p, b1_p, w2_row, b2_p,
                              tb=tb, tk=tk, single_buffer=single,
                              vmem_limit=vmem_limit)
    except Exception:
        if not single:
            raise
        _BUFFERED1_OK[0] = False        # this build rejects Buffered(1); retry
        out = _pallas_forward(x_in, w1_p, b1_p, w2_row, b2_p,
                              tb=tb, tk=tk, single_buffer=False,
                              vmem_limit=vmem_limit)
    return out


def init_discriminator_params(key, input_size, hidden_size):
    """PyTorch nn.Linear-style init U(-1/sqrt(fan_in), +); weights stored (in, out)."""
    k1, k2, k3, k4 = jax.random.split(key, 4)
    bound1 = 1.0 / jnp.sqrt(jnp.float32(input_size))
    bound2 = 1.0 / jnp.sqrt(jnp.float32(hidden_size))
    w1 = jax.random.uniform(k1, (input_size, hidden_size), jnp.float32, -bound1, bound1)
    b1 = jax.random.uniform(k2, (hidden_size,), jnp.float32, -bound1, bound1)
    w2 = jax.random.uniform(k3, (hidden_size, 1), jnp.float32, -bound2, bound2)
    b2 = jax.random.uniform(k4, (1,), jnp.float32, -bound2, bound2)
    return w1, b1, w2, b2


def _bf16_reference(x2d, w1, b1, w2, b2):
    x_bf = x2d.astype(jnp.bfloat16).astype(jnp.float32)
    w1_bf = w1.astype(jnp.bfloat16).astype(jnp.float32)
    h = jnp.maximum(x_bf @ w1_bf + b1, 0.0)
    return jax.nn.sigmoid(h @ w2 + b2)


if __name__ == "__main__":
    key = jax.random.PRNGKey(0)
    k_x, k_p, k_x2, k_p2, k_x3, k_p3 = jax.random.split(key, 6)

    # --- Test 1: module-sized example, batch=2, obs (4,4,4) -> input_size=64.
    x = jax.random.normal(k_x, (2, 4, 4, 4), jnp.float32)
    input_size, hidden_size = 64, 32
    w1, b1, w2, b2 = init_discriminator_params(k_p, input_size, hidden_size)
    params = prepare_discriminator_params(w1, b1, w2, b2)

    out = jax.block_until_ready(discriminator_forward(x, params))
    assert out.shape == (2, 1)

    x2d = x.reshape(2, -1)
    ref = _bf16_reference(x2d, w1, b1, w2, b2)
    assert jnp.allclose(out, ref, atol=2e-3, rtol=2e-3), (out, ref)
    ref_f32 = jax.nn.sigmoid(jnp.maximum(x2d @ w1 + b1, 0.0) @ w2 + b2)
    assert jnp.allclose(out, ref_f32, atol=3e-2, rtol=3e-2)

    # --- Test 2: zero-copy fast path (input_size % 128 == 0) + 2 batch tiles.
    xb = jax.random.normal(k_x2, (600, 256), jnp.float32)
    w1b, b1b, w2b, b2b = init_discriminator_params(k_p2, 256, 64)
    params_b = prepare_discriminator_params(w1b, b1b, w2b, b2b)
    out_b = jax.block_until_ready(discriminator_forward(xb, params_b))
    ref_b = _bf16_reference(xb, w1b, b1b, w2b, b2b)
    assert out_b.shape == (600, 1)
    assert jnp.allclose(out_b, ref_b, atol=2e-3, rtol=2e-3)

    # --- Test 3: exercise the K-tiled accumulator path (force TK=128, n_k=2).
    xc = jax.random.normal(k_x3, (20, 256), jnp.float32)
    w1c, b1c, w2c, b2c = init_discriminator_params(k_p3, 256, 32)
    params_c = prepare_discriminator_params(w1c, b1c, w2c, b2c)
    out_c = jax.block_until_ready(discriminator_forward(xc, params_c, force_tk=128))
    ref_c = _bf16_reference(xc, w1c, b1c, w2c, b2c)
    assert out_c.shape == (20, 1)
    assert jnp.allclose(out_c, ref_c, atol=2e-3, rtol=2e-3)

    print("KERNEL_OK")
</pallas_src>

<mosaic_0001>
module attributes {stable_mosaic.version = 11 : i64} {
  func.func @_discriminator_kernel(%arg0: i32, %arg1: i32, %arg2: memref<16x128xbf16, #tpu.memory_space<vmem>>, %arg3: memref<128x128xbf16, #tpu.memory_space<vmem>>, %arg4: memref<1x128xf32, #tpu.memory_space<vmem>>, %arg5: memref<1x128xf32, #tpu.memory_space<vmem>>, %arg6: memref<1x1xf32, #tpu.memory_space<vmem>>, %arg7: memref<16x1xf32, #tpu.memory_space<vmem>>, %arg8: memref<16x128xf32, #tpu.memory_space<vmem>>) attributes {dimension_semantics = [#tpu.dimension_semantics<parallel>, #tpu.dimension_semantics<arbitrary>], iteration_bounds = array<i64: 1, 1>, scalar_prefetch = 0 : i64, scratch_operands = 1 : i64, tpu.core_type = #tpu.core_type<tc>, window_params = [{transform_indices = @transform_0, window_bounds = array<i64: 16, 128>}, {pipeline_mode = #tpu.pipeline_mode<synchronous>, transform_indices = @transform_1, window_bounds = array<i64: 128, 128>}, {pipeline_mode = #tpu.pipeline_mode<synchronous>, transform_indices = @transform_2, window_bounds = array<i64: 1, 128>}, {pipeline_mode = #tpu.pipeline_mode<synchronous>, transform_indices = @transform_3, window_bounds = array<i64: 1, 128>}, {pipeline_mode = #tpu.pipeline_mode<synchronous>, transform_indices = @transform_4, window_bounds = array<i64: 1, 1>}, {transform_indices = @transform_5, window_bounds = array<i64: 16, 1>}]} {
    %c0_i32 = arith.constant 0 : i32
    %0 = arith.cmpi eq, %arg1, %c0_i32 : i32
    %1 = arith.extui %0 : i1 to i32
    %c0_i32_0 = arith.constant 0 : i32
    %2 = arith.cmpi ne, %1, %c0_i32_0 : i32
    scf.if %2 {
      %cst_10 = arith.constant 0.000000e+00 : f32
      %12 = vector.broadcast %cst_10 : f32 to vector<16x128xf32>
      %c0_11 = arith.constant 0 : index
      %c0_12 = arith.constant 0 : index
      %13 = vector.load %arg8[%c0_11, %c0_12] : memref<16x128xf32, #tpu.memory_space<vmem>>, vector<16x128xf32>
      tpu.vector_store %arg8[%c0_11, %c0_12], %12 {strides = array<i32>} : memref<16x128xf32, #tpu.memory_space<vmem>>, vector<16x128xf32>,
    } else {
    }
    %c0 = arith.constant 0 : index
    %c0_1 = arith.constant 0 : index
    %3 = vector.load %arg8[%c0, %c0_1] : memref<16x128xf32, #tpu.memory_space<vmem>>, vector<16x128xf32>
    %c0_2 = arith.constant 0 : index
    %c0_3 = arith.constant 0 : index
    %4 = vector.load %arg2[%c0_2, %c0_3] : memref<16x128xbf16, #tpu.memory_space<vmem>>, vector<16x128xbf16>
    %c0_4 = arith.constant 0 : index
    %c0_5 = arith.constant 0 : index
    %5 = vector.load %arg3[%c0_4, %c0_5] : memref<128x128xbf16, #tpu.memory_space<vmem>>, vector<128x128xbf16>
    %cst = arith.constant dense<0.000000e+00> : vector<16x128xf32>
    %6 = tpu.matmul %4, %5, %cst {dimension_numbers = #tpu.dot_dimension_numbers<[1], [0], [0], [1], [0, 0, 1, 1], [], []>} : vector<16x128xbf16>, vector<128x128xbf16>, vector<16x128xf32> -> vector<16x128xf32>
    %7 = arith.addf %3, %6 : vector<16x128xf32>
    %c0_6 = arith.constant 0 : index
    %c0_7 = arith.constant 0 : index
    %8 = vector.load %arg8[%c0_6, %c0_7] : memref<16x128xf32, #tpu.memory_space<vmem>>, vector<16x128xf32>
    tpu.vector_store %arg8[%c0_6, %c0_7], %7 {strides = array<i32>} : memref<16x128xf32, #tpu.memory_space<vmem>>, vector<16x128xf32>,
    %c0_i32_8 = arith.constant 0 : i32
    %9 = arith.cmpi eq, %arg1, %c0_i32_8 : i32
    %10 = arith.extui %9 : i1 to i32
    %c0_i32_9 = arith.constant 0 : i32
    %11 = arith.cmpi ne, %10, %c0_i32_9 : i32
    scf.if %11 {
      %c0_10 = arith.constant 0 : index
      %c0_11 = arith.constant 0 : index
      %12 = vector.load %arg8[%c0_10, %c0_11] : memref<16x128xf32, #tpu.memory_space<vmem>>, vector<16x128xf32>
      %c0_12 = arith.constant 0 : index
      %c0_13 = arith.constant 0 : index
      %13 = vector.load %arg4[%c0_12, %c0_13] : memref<1x128xf32, #tpu.memory_space<vmem>>, vector<1x128xf32>
      %14 = vector.broadcast %13 : vector<1x128xf32> to vector<16x128xf32>
      %15 = arith.addf %12, %14 : vector<16x128xf32>
      %cst_14 = arith.constant 0.000000e+00 : f32
      %16 = vector.broadcast %cst_14 : f32 to vector<16x128xf32>
      %17 = arith.maximumf %15, %16 : vector<16x128xf32>
      %c0_15 = arith.constant 0 : index
      %c0_16 = arith.constant 0 : index
      %18 = vector.load %arg5[%c0_15, %c0_16] : memref<1x128xf32, #tpu.memory_space<vmem>>, vector<1x128xf32>
      %19 = vector.broadcast %18 : vector<1x128xf32> to vector<16x128xf32>
      %20 = arith.mulf %17, %19 : vector<16x128xf32>
      %cst_17 = arith.constant dense<0.000000e+00> : vector<16xf32>
      %21 = vector.multi_reduction <add>, %20, %cst_17 [1] : vector<16x128xf32> to vector<16xf32>
      %22 = vector.shape_cast %21 : vector<16xf32> to vector<16x1xf32>
      %c0_18 = arith.constant 0 : index
      %c0_19 = arith.constant 0 : index
      %23 = vector.load %arg6[%c0_18, %c0_19] : memref<1x1xf32, #tpu.memory_space<vmem>>, vector<1x1xf32>
      %24 = vector.broadcast %23 : vector<1x1xf32> to vector<16x1xf32>
      %25 = arith.addf %22, %24 : vector<16x1xf32>
      %26 = arith.negf %25 : vector<16x1xf32>
      %27 = math.exp %26 : vector<16x1xf32>
      %cst_20 = arith.constant 1.000000e+00 : f32
      %28 = vector.broadcast %cst_20 : f32 to vector<16x1xf32>
      %29 = arith.addf %28, %27 : vector<16x1xf32>
      %30 = arith.divf %28, %29 : vector<16x1xf32>
      %c0_21 = arith.constant 0 : index
      %c0_22 = arith.constant 0 : index
      %31 = vector.load %arg7[%c0_21, %c0_22] : memref<16x1xf32, #tpu.memory_space<vmem>>, vector<16x1xf32>
      tpu.vector_store %arg7[%c0_21, %c0_22], %30 {strides = array<i32>} : memref<16x1xf32, #tpu.memory_space<vmem>>, vector<16x1xf32>,
    } else {
    }
    return
  }
  func.func @transform_0(%arg0: i32, %arg1: i32) -> (i32, i32) {
    %c0_i32 = arith.constant 0 : i32
    return %arg0, %arg1 : i32, i32
  }
  func.func @transform_1(%arg0: i32, %arg1: i32) -> (i32, i32) {
    %c0_i32 = arith.constant 0 : i32
    %c0_i32_0 = arith.constant 0 : i32
    %c0_i32_1 = arith.constant 0 : i32
    return %c0_i32, %c0_i32_0 : i32, i32
  }
  func.func @transform_2(%arg0: i32, %arg1: i32) -> (i32, i32) {
    %c0_i32 = arith.constant 0 : i32
    %c0_i32_0 = arith.constant 0 : i32
    %c0_i32_1 = arith.constant 0 : i32
    return %c0_i32, %c0_i32_0 : i32, i32
  }
  func.func @transform_3(%arg0: i32, %arg1: i32) -> (i32, i32) {
    %c0_i32 = arith.constant 0 : i32
    %c0_i32_0 = arith.constant 0 : i32
    %c0_i32_1 = arith.constant 0 : i32
    return %c0_i32, %c0_i32_0 : i32, i32
  }
  func.func @transform_4(%arg0: i32, %arg1: i32) -> (i32, i32) {
    %c0_i32 = arith.constant 0 : i32
    %c0_i32_0 = arith.constant 0 : i32
    %c0_i32_1 = arith.constant 0 : i32
    return %c0_i32, %c0_i32_0 : i32, i32
  }
  func.func @transform_5(%arg0: i32, %arg1: i32) -> (i32, i32) {
    %c0_i32 = arith.constant 0 : i32
    %c0_i32_0 = arith.constant 0 : i32
    return %arg0, %c0_i32 : i32, i32
  }
}

module attributes {stable_mosaic.version = 11 : i64} {
  func.func @_discriminator_kernel(%arg0: i32, %arg1: i32, %arg2: memref<16x128xbf16, #tpu.memory_space<vmem>>, %arg3: memref<128x128xbf16, #tpu.memory_space<vmem>>, %arg4: memref<1x128xf32, #tpu.memory_space<vmem>>, %arg5: memref<1x128xf32, #tpu.memory_space<vmem>>, %arg6: memref<1x1xf32, #tpu.memory_space<vmem>>, %arg7: memref<16x1xf32, #tpu.memory_space<vmem>>, %arg8: memref<16x128xf32, #tpu.memory_space<vmem>>) attributes {dimension_semantics = [#tpu.dimension_semantics<parallel>, #tpu.dimension_semantics<arbitrary>], iteration_bounds = array<i64: 1, 1>, scalar_prefetch = 0 : i64, scratch_operands = 1 : i64, tpu.core_type = #tpu.core_type<tc>, window_params = [{transform_indices = @transform_0, window_bounds = array<i64: 16, 128>}, {pipeline_mode = #tpu.pipeline_mode<synchronous>, transform_indices = @transform_1, window_bounds = array<i64: 128, 128>}, {pipeline_mode = #tpu.pipeline_mode<synchronous>, transform_indices = @transform_2, window_bounds = array<i64: 1, 128>}, {pipeline_mode = #tpu.pipeline_mode<synchronous>, transform_indices = @transform_3, window_bounds = array<i64: 1, 128>}, {pipeline_mode = #tpu.pipeline_mode<synchronous>, transform_indices = @transform_4, window_bounds = array<i64: 1, 1>}, {transform_indices = @transform_5, window_bounds = array<i64: 16, 1>}]} {
    %c0_i32 = arith.constant 0 : i32
    %0 = arith.cmpi eq, %arg1, %c0_i32 : i32
    %1 = arith.extui %0 : i1 to i32
    %c0_i32_0 = arith.constant 0 : i32
    %2 = arith.cmpi ne, %1, %c0_i32_0 : i32
    scf.if %2 {
      %cst_10 = arith.constant 0.000000e+00 : f32
      %12 = vector.broadcast %cst_10 : f32 to vector<16x128xf32>
      %c0_11 = arith.constant 0 : index
      %c0_12 = arith.constant 0 : index
      %13 = vector.load %arg8[%c0_11, %c0_12] : memref<16x128xf32, #tpu.memory_space<vmem>>, vector<16x128xf32>
      tpu.vector_store %arg8[%c0_11, %c0_12], %12 {strides = array<i32>} : memref<16x128xf32, #tpu.memory_space<vmem>>, vector<16x128xf32>,
    } else {
    }
    %c0 = arith.constant 0 : index
    %c0_1 = arith.constant 0 : index
    %3 = vector.load %arg8[%c0, %c0_1] : memref<16x128xf32, #tpu.memory_space<vmem>>, vector<16x128xf32>
    %c0_2 = arith.constant 0 : index
    %c0_3 = arith.constant 0 : index
    %4 = vector.load %arg2[%c0_2, %c0_3] : memref<16x128xbf16, #tpu.memory_space<vmem>>, vector<16x128xbf16>
    %c0_4 = arith.constant 0 : index
    %c0_5 = arith.constant 0 : index
    %5 = vector.load %arg3[%c0_4, %c0_5] : memref<128x128xbf16, #tpu.memory_space<vmem>>, vector<128x128xbf16>
    %cst = arith.constant dense<0.000000e+00> : vector<16x128xf32>
    %6 = tpu.matmul %4, %5, %cst {dimension_numbers = #tpu.dot_dimension_numbers<[1], [0], [0], [1], [0, 0, 1, 1], [], []>} : vector<16x128xbf16>, vector<128x128xbf16>, vector<16x128xf32> -> vector<16x128xf32>
    %7 = arith.addf %3, %6 : vector<16x128xf32>
    %c0_6 = arith.constant 0 : index
    %c0_7 = arith.constant 0 : index
    %8 = vector.load %arg8[%c0_6, %c0_7] : memref<16x128xf32, #tpu.memory_space<vmem>>, vector<16x128xf32>
    tpu.vector_store %arg8[%c0_6, %c0_7], %7 {strides = array<i32>} : memref<16x128xf32, #tpu.memory_space<vmem>>, vector<16x128xf32>,
    %c0_i32_8 = arith.constant 0 : i32
    %9 = arith.cmpi eq, %arg1, %c0_i32_8 : i32
    %10 = arith.extui %9 : i1 to i32
    %c0_i32_9 = arith.constant 0 : i32
    %11 = arith.cmpi ne, %10, %c0_i32_9 : i32
    scf.if %11 {
      %c0_10 = arith.constant 0 : index
      %c0_11 = arith.constant 0 : index
      %12 = vector.load %arg8[%c0_10, %c0_11] : memref<16x128xf32, #tpu.memory_space<vmem>>, vector<16x128xf32>
      %c0_12 = arith.constant 0 : index
      %c0_13 = arith.constant 0 : index
      %13 = vector.load %arg4[%c0_12, %c0_13] : memref<1x128xf32, #tpu.memory_space<vmem>>, vector<1x128xf32>
      %14 = vector.broadcast %13 : vector<1x128xf32> to vector<16x128xf32>
      %15 = arith.addf %12, %14 : vector<16x128xf32>
      %cst_14 = arith.constant 0.000000e+00 : f32
      %16 = vector.broadcast %cst_14 : f32 to vector<16x128xf32>
      %17 = arith.maximumf %15, %16 : vector<16x128xf32>
      %c0_15 = arith.constant 0 : index
      %c0_16 = arith.constant 0 : index
      %18 = vector.load %arg5[%c0_15, %c0_16] : memref<1x128xf32, #tpu.memory_space<vmem>>, vector<1x128xf32>
      %19 = vector.broadcast %18 : vector<1x128xf32> to vector<16x128xf32>
      %20 = arith.mulf %17, %19 : vector<16x128xf32>
      %cst_17 = arith.constant dense<0.000000e+00> : vector<16xf32>
      %21 = vector.multi_reduction <add>, %20, %cst_17 [1] : vector<16x128xf32> to vector<16xf32>
      %22 = vector.shape_cast %21 : vector<16xf32> to vector<16x1xf32>
      %c0_18 = arith.constant 0 : index
      %c0_19 = arith.constant 0 : index
      %23 = vector.load %arg6[%c0_18, %c0_19] : memref<1x1xf32, #tpu.memory_space<vmem>>, vector<1x1xf32>
      %24 = vector.broadcast %23 : vector<1x1xf32> to vector<16x1xf32>
      %25 = arith.addf %22, %24 : vector<16x1xf32>
      %26 = arith.negf %25 : vector<16x1xf32>
      %27 = math.exp %26 : vector<16x1xf32>
      %cst_20 = arith.constant 1.000000e+00 : f32
      %28 = vector.broadcast %cst_20 : f32 to vector<16x1xf32>
      %29 = arith.addf %28, %27 : vector<16x1xf32>
      %30 = arith.divf %28, %29 : vector<16x1xf32>
      %c0_21 = arith.constant 0 : index
      %c0_22 = arith.constant 0 : index
      %31 = vector.load %arg7[%c0_21, %c0_22] : memref<16x1xf32, #tpu.memory_space<vmem>>, vector<16x1xf32>
      tpu.vector_store %arg7[%c0_21, %c0_22], %30 {strides = array<i32>} : memref<16x1xf32, #tpu.memory_space<vmem>>, vector<16x1xf32>,
    } else {
    }
    return
  }
  func.func @transform_0(%arg0: i32, %arg1: i32) -> (i32, i32) {
    %c0_i32 = arith.constant 0 : i32
    return %arg0, %arg1 : i32, i32
  }
  func.func @transform_1(%arg0: i32, %arg1: i32) -> (i32, i32) {
    %c0_i32 = arith.constant 0 : i32
    %c0_i32_0 = arith.constant 0 : i32
    %c0_i32_1 = arith.constant 0 : i32
    return %c0_i32, %c0_i32_0 : i32, i32
  }
  func.func @transform_2(%arg0: i32, %arg1: i32) -> (i32, i32) {
    %c0_i32 = arith.constant 0 : i32
    %c0_i32_0 = arith.constant 0 : i32
    %c0_i32_1 = arith.constant 0 : i32
    return %c0_i32, %c0_i32_0 : i32, i32
  }
  func.func @transform_3(%arg0: i32, %arg1: i32) -> (i32, i32) {
    %c0_i32 = arith.constant 0 : i32
    %c0_i32_0 = arith.constant 0 : i32
    %c0_i32_1 = arith.constant 0 : i32
    return %c0_i32, %c0_i32_0 : i32, i32
  }
  func.func @transform_4(%arg0: i32, %arg1: i32) -> (i32, i32) {
    %c0_i32 = arith.constant 0 : i32
    %c0_i32_0 = arith.constant 0 : i32
    %c0_i32_1 = arith.constant 0 : i32
    return %c0_i32, %c0_i32_0 : i32, i32
  }
  func.func @transform_5(%arg0: i32, %arg1: i32) -> (i32, i32) {
    %c0_i32 = arith.constant 0 : i32
    %c0_i32_0 = arith.constant 0 : i32
    return %arg0, %c0_i32 : i32, i32
  }
}

</mosaic_0001>

<bundles_post_ra>
// kernel: tpu_custom_call.1
= control target key start
LH: loop header
LB: loop body
LE: loop exit
PB: predicated region body
PF: predicated region fallthrough
CT: control target
= control target key end

     0   :  { %s485_s0 = inlined_call_operand.vmem [shape: bf16[2,128], index: 0, kind: input, shape index: {}]   ;;  %s486_s1 = inlined_call_operand.hbm [shape: bf16[128,128], index: 1, kind: input, shape index: {}]   ;;  %s487_s2 = inlined_call_operand.vmem [shape: f32[1,128], index: 2, kind: input, shape index: {}]   ;;  %s488_s3 = inlined_call_operand.vmem [shape: f32[1,128], index: 3, kind: input, shape index: {}]   ;;  %s489_s4 = inlined_call_operand.<no memory space> [shape: f32[1,1], index: 4, kind: input, shape index: {}]   ;;  %s490_s5 = inlined_call_operand.vmem [shape: f32[2,1], index: 5, kind: output, shape index: {}]  }
   0x1   :  { %v10_v0 = vstv %s489_s4 }
   0x2   :  { %11 = vst [vmem:[#allocation3] sm:$0x1] %v10_v0 }
   0x3   :  { %12 = vsyncpa [#allocation5], 0  ;;  %s401_s20 = smov [#allocation4]   ;;  %s377_s24 = scalar_lea.hbm %s486_s1, 1024 }
   0x4   :  { %s20_s21 = sshll.u32 %s401_s20, 4  ;;  %p378_p0 = scmp.ne.s32.totalorder %s486_s1, %s377_s24  ;;  %s21_s21 = int_to_ptr.vmem [resolvable:$true] %s20_s21 }
   0x5   :  { %p381_p1 = scmp.lt.u32.totalorder %s377_s24, %s486_s1 }
   0x7   :  { %p383_p2 = pnand %p381_p1, %p378_p0 }
   0x9   :  { %386 = shalt.err (!%p383_p2)
}
   0xa   :  { %s387_s4 = scalar_lea.vmem %s21_s21, 1024  ;;  %p392_p4 = scmp.lt.s32.totalorder %s21_s21, %s21_s21 }
   0xb   :  { %p388_p3 = scmp.ne.s32.totalorder %s21_s21, %s387_s4  ;;  %p393_p5 = scmp.lt.s32.totalorder %s387_s4, %s387_s4 }
   0xd   :  { %p394_p6 = por %p393_p5, %p392_p4 }
   0xf   :  { %p395_p7 = pnand %p394_p6, %p388_p3 }
  0x11   :  { %398 = shalt.err (!%p395_p7)
}
  0x12   :  { %s402_s29 = smov 64   ;;  %s403_s30 = smov 4  }
  0x13   :  { %26 = dma.hbm_to_vmem [thread:$0]  %s486_s1, 1024, %s21_s21, [#allocation5], %s402_s29, %s402_s29, %s403_s30  }
  0x14   :  { %399 = dma.done.wait [#allocation5], 1024  }
  0x15   :  { %400 = vsyncadd [#allocation5], 4294966272  ;;  %v404_v1 = vmov 0.0   ;;  %vm405_vm0 = vmmov 0   ;;  %v361_v2 = vld [vmem:[#allocation4] sm:$0xff]   ;;  %v362_v3 = vld [vmem:[#allocation4 + $0x8] sm:$0xff]   ;;  %v84_v6 = vlaneseq }
  0x16   :  { %335 = vmatprep.subr.bf16.mxu0 %v404_v1  ;;  %351 = vmatprep.mubr.msk.bf16.mxu0 %vm405_vm0, %v404_v1  ;;  %v406_v4 = vmov 1966171168   ;;  %v363_v7 = vld [vmem:[#allocation4 + $0x10] sm:$0xff]   ;;  %v364_v8 = vld [vmem:[#allocation4 + $0x18] sm:$0xff]   ;;  %v46_v10 = vld [vmem:[%s485_s0 + $0x1] sm:$0x1] }
  0x17   :  { %336 = vmatpush3.bf16.msra.mxu0 %v361_v2  ;;  %v82_v5 = vunpack.c.l.s4 %v406_v4  ;;  %v45_v9 = vld [vmem:[%s485_s0] sm:$0x1]  ;;  %v85_v12 = vshrl.u32 %v84_v6, 7  ;;  %v47_v13 = vld [vmem:[%s485_s0 + $0x2] sm:$0x1]  ;;  %v366_v29 = vld [vmem:[#allocation4 + $0x28] sm:$0xff]  }
  0x18   :  { %337 = vmatprep.subr.bf16.mxu0 %v404_v1  ;;  %v48_v14 = vld [vmem:[%s485_s0 + $0x3] sm:$0x1]  ;;  %v49_v15 = vld [vmem:[%s485_s0 + $0x4] sm:$0x1]  ;;  %v50_v16 = vld [vmem:[%s485_s0 + $0x5] sm:$0x1]  ;;  %v77_v20 = vcombine.low %v45_v9, %v46_v10 }
  0x19   :  { %v83_v11 = vunpack.c.0.s8 %v82_v5  ;;  %v51_v17 = vld [vmem:[%s485_s0 + $0x6] sm:$0x1]  ;;  %v52_v18 = vld [vmem:[%s485_s0 + $0x7] sm:$0x1]  ;;  %v78_v21 = vcombine.low %v47_v13, %v48_v14  ;;  %v79_v22 = vcombine.low %v49_v15, %v50_v16  ;;  %v367_v32 = vld [vmem:[#allocation4 + $0x30] sm:$0xff]   ;;  %vm270_vm1 = vcmask 7168  }
  0x1a   :  { %v80_v23 = vcombine.low %v51_v17, %v52_v18  ;;  %v365_v24 = vld [vmem:[#allocation4 + $0x20] sm:$0xff]   ;;  %v368_v35 = vld [vmem:[#allocation4 + $0x38] sm:$0xff]  }
  0x1b   :  { %338 = vmatpush3.bf16.msra.mxu0 %v362_v3  ;;  %v86_v19 = vsub.s32 %v83_v11, %v85_v12  ;;  %v321_v37 = vld [vmem:[%s487_s2] ss:$0 sm:$0xff] }
  0x1c   :  { %339 = vmatprep.subr.bf16.mxu0 %v404_v1  ;;  %v322_v42 = vld [vmem:[%s488_s3] ss:$0 sm:$0xff] }
  0x1d   :  { %v87_v25 = vrot.slane %v77_v20, %v86_v19  ;;  %v94_v26 = vrot.slane %v78_v21, %v86_v19  ;;  %v101_v27 = vrot.slane %v79_v22, %v86_v19  ;;  %v108_v28 = vrot.slane %v80_v23, %v86_v19  ;;  %v323_v49 = vld [vmem:[#allocation3] ss:$0 sm:$0xff] }
  0x1f   :  { %340 = vmatpush3.bf16.msra.mxu0 %v363_v7  ;;  %v109_v30 = vcombine.low %v87_v25, %v94_v26  ;;  %v110_v31 = vcombine.low %v101_v27, %v108_v28 }
  0x20   :  { %341 = vmatprep.subr.bf16.mxu0 %v404_v1 }
  0x21   :  { %v117_v33 = vrot.slane %v109_v30, %v86_v19  ;;  %v124_v34 = vrot.slane %v110_v31, %v86_v19 }
  0x23   :  { %342 = vmatpush3.bf16.msra.mxu0 %v364_v8  ;;  %v125_v36 = vcombine.low %v117_v33, %v124_v34 }
  0x24   :  { %343 = vmatprep.subr.bf16.mxu0 %v404_v1 }
  0x27   :  { %344 = vmatpush3.bf16.msra.mxu0 %v365_v24 }
  0x28   :  { %345 = vmatprep.subr.bf16.mxu0 %v404_v1 }
  0x2b   :  { %346 = vmatpush3.bf16.msra.mxu0 %v366_v29 }
  0x2c   :  { %347 = vmatprep.subr.bf16.mxu0 %v404_v1 }
  0x2f   :  { %348 = vmatpush3.bf16.msra.mxu0 %v367_v32 }
  0x30   :  { %349 = vmatprep.subr.bf16.mxu0 %v404_v1 }
  0x33   :  { %350 = vmatpush3.bf16.msra.mxu0 %v368_v35 }
  0x36   :  { %352 = vmatmul.mubr.bf16.vlgmr.msra.gmra.mrb[0].mxu0 %v125_v36 }
 0x109   :  { %v209_v38 = vpop.f32.mrb[0].mxu0 }
 0x10a   :  { %v232_v39 = vadd.f32 %v321_v37, %v209_v38  ;;  %v353_v40 = vpop.f32.mrb[1].mxu0 }
 0x10b   :  { %v212_v41 = vpop.f32.mrb[2].mxu0 }
 0x10c   :  { %v234_v43 = vmax.f32 %v232_v39, 0.0  ;;  %v233_v44 = vadd.f32 %v321_v37, %v212_v41  ;;  %v354_v45 = vpop.f32.mrb[3].mxu0 }
 0x10e   :  { %v235_v46 = vmax.f32 %v233_v44, 0.0  ;;  %v243_v47 = vmul.f32 %v322_v42, %v234_v43 }
 0x110   :  { %245 = vadd.xlane.f32.xlu0 %v243_v47  ;;  %v244_v48 = vmul.f32 %v322_v42, %v235_v46 }
 0x114   :  { %247 = vadd.xlane.f32.xlu0 %v244_v48 }
 0x19d   :  { %v246_v50 = vpop.xlane.xlu0 %245 }
 0x19e   :  { %v256_v51 = vadd.f32 %v323_v49, %v246_v50 }
 0x1a0   :  { %v324_v52 = vmul.f32 -1.442695, %v256_v51 }
 0x1a1   :  { %v248_v53 = vpop.xlane.xlu0 %247 }
 0x1a2   :  { %369 = vpow2.f32 %v324_v52  ;;  %v257_v54 = vadd.f32 %v323_v49, %v248_v53 }
 0x1a4   :  { %v325_v55 = vmul.f32 -1.442695, %v257_v54 }
 0x1a6   :  { %371 = vpow2.f32 %v325_v55 }
 0x1ac   :  { %v370_v56 = vpop.eup %369 }
 0x1ad   :  { %v264_v57 = vadd.f32 1.0, %v370_v56 }
 0x1af   :  { %373 = vrcp.f32 %v264_v57 }
 0x1b0   :  { %v372_v58 = vpop.eup %371 }
 0x1b1   :  { %v265_v59 = vadd.f32 1.0, %v372_v58 }
 0x1b3   :  { %375 = vrcp.f32 %v265_v59 }
 0x1b9   :  { %v374_v60 = vpop.eup %373 }
 0x1ba   :  { %271 = vst.msk [vmem:[#allocation6] sm:$0xff] %vm270_vm1, %v374_v60 }
 0x1bd   :  { %v376_v61 = vpop.eup %375 }
 0x1c1   :  { %v290_v62 = vld [vmem:[#allocation6] sm:$0x3] }
 0x1c2   :  { %291 = vst [vmem:[%s490_s5] sm:$0x3] %v290_v62 }
 0x1c3   :  { %308 = vsyncpa [#allocation5], 1 }

// kernel: tpu_custom_call.1
= control target key start
LH: loop header
LB: loop body
LE: loop exit
PB: predicated region body
PF: predicated region fallthrough
CT: control target
= control target key end

     0   :  { %s485_s0 = inlined_call_operand.vmem [shape: bf16[2,128], index: 0, kind: input, shape index: {}]   ;;  %s486_s1 = inlined_call_operand.hbm [shape: bf16[128,128], index: 1, kind: input, shape index: {}]   ;;  %s487_s2 = inlined_call_operand.vmem [shape: f32[1,128], index: 2, kind: input, shape index: {}]   ;;  %s488_s3 = inlined_call_operand.vmem [shape: f32[1,128], index: 3, kind: input, shape index: {}]   ;;  %s489_s4 = inlined_call_operand.<no memory space> [shape: f32[1,1], index: 4, kind: input, shape index: {}]   ;;  %s490_s5 = inlined_call_operand.vmem [shape: f32[2,1], index: 5, kind: output, shape index: {}]  }
   0x1   :  { %v10_v0 = vstv %s489_s4 }
   0x2   :  { %11 = vst [vmem:[#allocation3] sm:$0x1] %v10_v0 }
   0x3   :  { %12 = vsyncpa [#allocation5], 0  ;;  %s401_s20 = smov [#allocation4]   ;;  %s377_s24 = scalar_lea.hbm %s486_s1, 1024 }
   0x4   :  { %s20_s21 = sshll.u32 %s401_s20, 4  ;;  %p378_p0 = scmp.ne.s32.totalorder %s486_s1, %s377_s24  ;;  %s21_s21 = int_to_ptr.vmem [resolvable:$true] %s20_s21 }
   0x5   :  { %p381_p1 = scmp.lt.u32.totalorder %s377_s24, %s486_s1 }
   0x7   :  { %p383_p2 = pnand %p381_p1, %p378_p0 }
   0x9   :  { %386 = shalt.err (!%p383_p2)
}
   0xa   :  { %s387_s4 = scalar_lea.vmem %s21_s21, 1024  ;;  %p392_p4 = scmp.lt.s32.totalorder %s21_s21, %s21_s21 }
   0xb   :  { %p388_p3 = scmp.ne.s32.totalorder %s21_s21, %s387_s4  ;;  %p393_p5 = scmp.lt.s32.totalorder %s387_s4, %s387_s4 }
   0xd   :  { %p394_p6 = por %p393_p5, %p392_p4 }
   0xf   :  { %p395_p7 = pnand %p394_p6, %p388_p3 }
  0x11   :  { %398 = shalt.err (!%p395_p7)
}
  0x12   :  { %s402_s29 = smov 64   ;;  %s403_s30 = smov 4  }
  0x13   :  { %26 = dma.hbm_to_vmem [thread:$0]  %s486_s1, 1024, %s21_s21, [#allocation5], %s402_s29, %s402_s29, %s403_s30  }
  0x14   :  { %399 = dma.done.wait [#allocation5], 1024  }
  0x15   :  { %400 = vsyncadd [#allocation5], 4294966272  ;;  %v404_v1 = vmov 0.0   ;;  %vm405_vm0 = vmmov 0   ;;  %v361_v2 = vld [vmem:[#allocation4] sm:$0xff]   ;;  %v362_v3 = vld [vmem:[#allocation4 + $0x8] sm:$0xff]   ;;  %v84_v6 = vlaneseq }
  0x16   :  { %335 = vmatprep.subr.bf16.mxu0 %v404_v1  ;;  %351 = vmatprep.mubr.msk.bf16.mxu0 %vm405_vm0, %v404_v1  ;;  %v406_v4 = vmov 1966171168   ;;  %v363_v7 = vld [vmem:[#allocation4 + $0x10] sm:$0xff]   ;;  %v364_v8 = vld [vmem:[#allocation4 + $0x18] sm:$0xff]   ;;  %v46_v10 = vld [vmem:[%s485_s0 + $0x1] sm:$0x1] }
  0x17   :  { %336 = vmatpush3.bf16.msra.mxu0 %v361_v2  ;;  %v82_v5 = vunpack.c.l.s4 %v406_v4  ;;  %v45_v9 = vld [vmem:[%s485_s0] sm:$0x1]  ;;  %v85_v12 = vshrl.u32 %v84_v6, 7  ;;  %v47_v13 = vld [vmem:[%s485_s0 + $0x2] sm:$0x1]  ;;  %v366_v29 = vld [vmem:[#allocation4 + $0x28] sm:$0xff]  }
  0x18   :  { %337 = vmatprep.subr.bf16.mxu0 %v404_v1  ;;  %v48_v14 = vld [vmem:[%s485_s0 + $0x3] sm:$0x1]  ;;  %v49_v15 = vld [vmem:[%s485_s0 + $0x4] sm:$0x1]  ;;  %v50_v16 = vld [vmem:[%s485_s0 + $0x5] sm:$0x1]  ;;  %v77_v20 = vcombine.low %v45_v9, %v46_v10 }
  0x19   :  { %v83_v11 = vunpack.c.0.s8 %v82_v5  ;;  %v51_v17 = vld [vmem:[%s485_s0 + $0x6] sm:$0x1]  ;;  %v52_v18 = vld [vmem:[%s485_s0 + $0x7] sm:$0x1]  ;;  %v78_v21 = vcombine.low %v47_v13, %v48_v14  ;;  %v79_v22 = vcombine.low %v49_v15, %v50_v16  ;;  %v367_v32 = vld [vmem:[#allocation4 + $0x30] sm:$0xff]   ;;  %vm270_vm1 = vcmask 7168  }
  0x1a   :  { %v80_v23 = vcombine.low %v51_v17, %v52_v18  ;;  %v365_v24 = vld [vmem:[#allocation4 + $0x20] sm:$0xff]   ;;  %v368_v35 = vld [vmem:[#allocation4 + $0x38] sm:$0xff]  }
  0x1b   :  { %338 = vmatpush3.bf16.msra.mxu0 %v362_v3  ;;  %v86_v19 = vsub.s32 %v83_v11, %v85_v12  ;;  %v321_v37 = vld [vmem:[%s487_s2] ss:$0 sm:$0xff] }
  0x1c   :  { %339 = vmatprep.subr.bf16.mxu0 %v404_v1  ;;  %v322_v42 = vld [vmem:[%s488_s3] ss:$0 sm:$0xff] }
  0x1d   :  { %v87_v25 = vrot.slane %v77_v20, %v86_v19  ;;  %v94_v26 = vrot.slane %v78_v21, %v86_v19  ;;  %v101_v27 = vrot.slane %v79_v22, %v86_v19  ;;  %v108_v28 = vrot.slane %v80_v23, %v86_v19  ;;  %v323_v49 = vld [vmem:[#allocation3] ss:$0 sm:$0xff] }
  0x1f   :  { %340 = vmatpush3.bf16.msra.mxu0 %v363_v7  ;;  %v109_v30 = vcombine.low %v87_v25, %v94_v26  ;;  %v110_v31 = vcombine.low %v101_v27, %v108_v28 }
  0x20   :  { %341 = vmatprep.subr.bf16.mxu0 %v404_v1 }
  0x21   :  { %v117_v33 = vrot.slane %v109_v30, %v86_v19  ;;  %v124_v34 = vrot.slane %v110_v31, %v86_v19 }
  0x23   :  { %342 = vmatpush3.bf16.msra.mxu0 %v364_v8  ;;  %v125_v36 = vcombine.low %v117_v33, %v124_v34 }
  0x24   :  { %343 = vmatprep.subr.bf16.mxu0 %v404_v1 }
  0x27   :  { %344 = vmatpush3.bf16.msra.mxu0 %v365_v24 }
  0x28   :  { %345 = vmatprep.subr.bf16.mxu0 %v404_v1 }
  0x2b   :  { %346 = vmatpush3.bf16.msra.mxu0 %v366_v29 }
  0x2c   :  { %347 = vmatprep.subr.bf16.mxu0 %v404_v1 }
  0x2f   :  { %348 = vmatpush3.bf16.msra.mxu0 %v367_v32 }
  0x30   :  { %349 = vmatprep.subr.bf16.mxu0 %v404_v1 }
  0x33   :  { %350 = vmatpush3.bf16.msra.mxu0 %v368_v35 }
  0x36   :  { %352 = vmatmul.mubr.bf16.vlgmr.msra.gmra.mrb[0].mxu0 %v125_v36 }
 0x109   :  { %v209_v38 = vpop.f32.mrb[0].mxu0 }
 0x10a   :  { %v232_v39 = vadd.f32 %v321_v37, %v209_v38  ;;  %v353_v40 = vpop.f32.mrb[1].mxu0 }
 0x10b   :  { %v212_v41 = vpop.f32.mrb[2].mxu0 }
 0x10c   :  { %v234_v43 = vmax.f32 %v232_v39, 0.0  ;;  %v233_v44 = vadd.f32 %v321_v37, %v212_v41  ;;  %v354_v45 = vpop.f32.mrb[3].mxu0 }
 0x10e   :  { %v235_v46 = vmax.f32 %v233_v44, 0.0  ;;  %v243_v47 = vmul.f32 %v322_v42, %v234_v43 }
 0x110   :  { %245 = vadd.xlane.f32.xlu0 %v243_v47  ;;  %v244_v48 = vmul.f32 %v322_v42, %v235_v46 }
 0x114   :  { %247 = vadd.xlane.f32.xlu0 %v244_v48 }
 0x19d   :  { %v246_v50 = vpop.xlane.xlu0 %245 }
 0x19e   :  { %v256_v51 = vadd.f32 %v323_v49, %v246_v50 }
 0x1a0   :  { %v324_v52 = vmul.f32 -1.442695, %v256_v51 }
 0x1a1   :  { %v248_v53 = vpop.xlane.xlu0 %247 }
 0x1a2   :  { %369 = vpow2.f32 %v324_v52  ;;  %v257_v54 = vadd.f32 %v323_v49, %v248_v53 }
 0x1a4   :  { %v325_v55 = vmul.f32 -1.442695, %v257_v54 }
 0x1a6   :  { %371 = vpow2.f32 %v325_v55 }
 0x1ac   :  { %v370_v56 = vpop.eup %369 }
 0x1ad   :  { %v264_v57 = vadd.f32 1.0, %v370_v56 }
 0x1af   :  { %373 = vrcp.f32 %v264_v57 }
 0x1b0   :  { %v372_v58 = vpop.eup %371 }
 0x1b1   :  { %v265_v59 = vadd.f32 1.0, %v372_v58 }
 0x1b3   :  { %375 = vrcp.f32 %v265_v59 }
 0x1b9   :  { %v374_v60 = vpop.eup %373 }
 0x1ba   :  { %271 = vst.msk [vmem:[#allocation6] sm:$0xff] %vm270_vm1, %v374_v60 }
 0x1bd   :  { %v376_v61 = vpop.eup %375 }
 0x1c1   :  { %v290_v62 = vld [vmem:[#allocation6] sm:$0x3] }
 0x1c2   :  { %291 = vst [vmem:[%s490_s5] sm:$0x3] %v290_v62 }
 0x1c3   :  { %308 = vsyncpa [#allocation5], 1 }

</bundles_post_ra>
